<compile_context>
chip_gen: v5e
topology: v5e:2x2
jax: 0.10.0
libtpu: 0.0.40
codegen_flags: <defaults>
</compile_context>

<pallas_src>
import functools
import math

import jax
import jax.numpy as jnp
from jax import lax
from jax.experimental import pallas as pl
from jax.experimental.pallas import tpu as pltpu


def _seq2map_kernel(xe_ref, pos_ref, wqk_ref, bqk_ref, out_ref, q_scr, k_scr,
                    *, emb_scale, inv_sqrt_dk, dk, tq, l_actual, l_pad,
                    mm_dtype):
    # xe_ref : (1, L_pad, H)   token embeddings for this batch element
    # pos_ref: (L_pad, H)      positional embeddings (shared across batch)
    # wqk_ref: (H, 2*Dk)       fused [Wq | Wk];  bqk_ref: (1, 2*Dk)
    # out_ref: (1, TQ, L)      softmax attention rows for this q-tile (unpadded cols)
    # q_scr  : (L_pad, Dk)     pre-scaled queries (per-batch scratch, mm_dtype)
    # k_scr  : (L_pad, Dk)     keys (per-batch scratch, mm_dtype)
    qt = pl.program_id(1)

    # Per-batch phase: embed-scale + pos-add + fused QK projection, once.
    @pl.when(qt == 0)
    def _():
        x = xe_ref[0] * emb_scale + pos_ref[...]                     # (L_pad, H)
        qk = jnp.dot(x.astype(mm_dtype), wqk_ref[...].astype(mm_dtype),
                     preferred_element_type=jnp.float32) + bqk_ref[...]
        q_scr[...] = (qk[:, :dk] * inv_sqrt_dk).astype(q_scr.dtype)  # scale on q
        k_scr[...] = qk[:, dk:].astype(k_scr.dtype)

    # Per-q-tile phase: scores + row softmax.
    row0 = qt * tq
    if tq % 8 == 0:
        row0 = pl.multiple_of(row0, tq)
    q = q_scr[pl.ds(row0, tq), :]                                    # (TQ, Dk)
    scores = lax.dot_general(
        q, k_scr[...],
        dimension_numbers=(((1,), (1,)), ((), ())),                  # q @ k^T, no transpose
        preferred_element_type=jnp.float32)                          # (TQ, L_pad)

    if l_actual != l_pad:
        # Additive bias row (broadcast over query rows): 0 for valid keys,
        # -1e30 for padded keys (finite -> no inf-inf with the max-subtract).
        col = lax.broadcasted_iota(jnp.int32, (1, l_pad), 1)
        bias = jnp.where(col < l_actual, 0.0, -1e30)
        scores = scores + bias

    m = jnp.max(scores, axis=-1, keepdims=True)
    e = jnp.exp(scores - m)
    denom = jnp.sum(e, axis=-1, keepdims=True)
    inv = pl.reciprocal(denom, approx=True)                          # EUP
    inv = inv * (2.0 - denom * inv)                                  # Newton step -> f32 accuracy
    out_ref[0] = (e * inv)[:, :l_actual]                             # drop padded key cols


def _round_up(x, m):
    return (x + m - 1) // m * m


def _pick_config(L, L_pad, H, Dk):
    """Pick the q-tile size and an explicit scoped-VMEM limit (generation aware)."""
    try:
        vmem_cap = int(pltpu.get_tpu_info().vmem_capacity_bytes)
    except Exception:  # noqa: BLE001 - conservative fallback (v7x-sized VMEM)
        vmem_cap = 64 * 1024 * 1024
    budget = int(vmem_cap * 0.75)
    lane_l = _round_up(L, 128)

    def working_set(tq):
        out_blk = tq * lane_l * 4              # output block
        xe = L_pad * H * 4                     # token embeds
        pos = L_pad * H * 4                    # pos embeds
        w = (H * 2 * Dk + 8 * 2 * Dk) * 4      # fused weights + bias
        scratch = 2 * L_pad * Dk * 4           # q_scr + k_scr (f32 upper bound)
        tmp = 4 * tq * L_pad * 4               # scores / exp temporaries headroom
        return 2 * (out_blk + xe + pos + w) + scratch + tmp   # 2x = double-buffering

    candidates = (512, 256, 128) if vmem_cap >= 96 * 1024 * 1024 else (256, 128)
    tq = 128
    for c in candidates:
        if L_pad % c == 0 and working_set(c) <= budget:
            tq = c
            break
    limit = min(budget, max(working_set(tq) + (4 << 20), 32 << 20))
    return tq, int(limit)


def seq2map_forward(src, tok_emb, pos_emb, wq, bq, wk, bk, num_hidden,
                    *, matmul_dtype=jnp.float32):
    """src: [B, L] int32 tokens. Returns attention map [B, L, L] float32."""
    B, L = src.shape
    H = tok_emb.shape[1]
    Dk = wq.shape[1]

    # Internal compute padded to a multiple of 128 keys (aligned MXU/VMEM
    # tiles); the OUTPUT is written directly at (B, L, L) — no wrapper slice.
    L_pad = _round_up(L, 128)
    tq_grid, vmem_limit = _pick_config(L, L_pad, H, Dk)
    tq_blk = min(tq_grid, L)          # == tq_grid unless L < tq_grid (then 1 tile)
    n_qt = L_pad // tq_grid

    # Glue (plain JAX): embedding gather (+pad, fused by XLA), weight fusion.
    xe = jnp.take(tok_emb, src, axis=0).astype(jnp.float32)         # (B, L, H)
    pos = pos_emb[:L].astype(jnp.float32)
    if L_pad != L:
        xe = jnp.pad(xe, ((0, 0), (0, L_pad - L), (0, 0)))
        pos = jnp.pad(pos, ((0, L_pad - L), (0, 0)))
    wqk = jnp.concatenate([wq, wk], axis=1).astype(jnp.float32)      # (H, 2*Dk)
    bqk = jnp.concatenate([bq, bk], axis=1).astype(jnp.float32)      # (1, 2*Dk)

    kernel = functools.partial(
        _seq2map_kernel,
        emb_scale=float(math.sqrt(num_hidden)),
        inv_sqrt_dk=float(1.0 / math.sqrt(Dk)),
        dk=Dk, tq=tq_blk, l_actual=L, l_pad=L_pad, mm_dtype=matmul_dtype,
    )

    return pl.pallas_call(
        kernel,
        out_shape=jax.ShapeDtypeStruct((B, L, L), jnp.float32),
        grid_spec=pltpu.PrefetchScalarGridSpec(
            num_scalar_prefetch=0,
            grid=(B, n_qt),
            in_specs=[
                pl.BlockSpec((1, L_pad, H), lambda b, qt: (b, 0, 0)),   # token embeds
                pl.BlockSpec((L_pad, H), lambda b, qt: (0, 0)),         # pos embeds
                pl.BlockSpec((H, 2 * Dk), lambda b, qt: (0, 0)),        # fused Wqk
                pl.BlockSpec((1, 2 * Dk), lambda b, qt: (0, 0)),        # fused bqk
            ],
            out_specs=pl.BlockSpec((1, tq_blk, L), lambda b, qt: (b, qt, 0)),
            scratch_shapes=[
                pltpu.VMEM((L_pad, Dk), matmul_dtype),                  # q (pre-scaled)
                pltpu.VMEM((L_pad, Dk), matmul_dtype),                  # k
            ],
        ),
        compiler_params=pltpu.CompilerParams(
            # Batch axis shards across TensorCores; the q-tile axis carries the
            # per-batch projection scratch -> "arbitrary".
            dimension_semantics=("parallel", "arbitrary"),
            vmem_limit_bytes=vmem_limit,
        ),
    )(xe, pos, wqk, bqk)


if __name__ == "__main__":
    # Small, deterministic configuration consistent with the module defaults.
    B, L = 2, 8
    input_dim = 4          # vocab size
    num_hidden = 128       # embedding / hidden dim
    qk_dim = 128           # query_key_dim (== num_hidden in __init__)
    max_length = 3000

    key = jax.random.PRNGKey(0)
    k_tok, k_pos, k_wq, k_bq, k_wk, k_bk, k_src = jax.random.split(key, 7)

    tok_emb = jax.random.normal(k_tok, (input_dim, num_hidden), jnp.float32)
    pos_emb = jax.random.normal(k_pos, (max_length, num_hidden), jnp.float32) * 0.02
    wq = jax.random.normal(k_wq, (num_hidden, qk_dim), jnp.float32) * 0.05
    bq = jax.random.normal(k_bq, (1, qk_dim), jnp.float32) * 0.01
    wk = jax.random.normal(k_wk, (num_hidden, qk_dim), jnp.float32) * 0.05
    bk = jax.random.normal(k_bk, (1, qk_dim), jnp.float32) * 0.01

    src = jax.random.randint(k_src, (B, L), 0, input_dim, dtype=jnp.int32)

    attn = seq2map_forward(src, tok_emb, pos_emb, wq, bq, wk, bk, num_hidden)
    attn = jax.block_until_ready(attn)

    # Sanity: reference in plain JAX.
    x_ref = jnp.take(tok_emb, src, axis=0) * math.sqrt(num_hidden) + pos_emb[:L][None]
    q_ref = x_ref @ wq + bq
    k_ref = x_ref @ wk + bk
    s_ref = jnp.einsum("bqd,bkd->bqk", q_ref, k_ref) / math.sqrt(qk_dim)
    ref = jax.nn.softmax(s_ref, axis=-1)
    assert attn.shape == (B, L, L)
    assert jnp.allclose(attn, ref, atol=1e-4, rtol=1e-4), "mismatch vs reference"

    print("KERNEL_OK")
</pallas_src>

<mosaic_0001>
module attributes {stable_mosaic.version = 11 : i64} {
  func.func @_seq2map_kernel(%arg0: i32, %arg1: i32, %arg2: memref<1x128x128xf32, #tpu.memory_space<vmem>>, %arg3: memref<128x128xf32, #tpu.memory_space<vmem>>, %arg4: memref<128x256xf32, #tpu.memory_space<vmem>>, %arg5: memref<1x256xf32, #tpu.memory_space<vmem>>, %arg6: memref<1x8x8xf32, #tpu.memory_space<vmem>>, %arg7: memref<128x128xf32, #tpu.memory_space<vmem>>, %arg8: memref<128x128xf32, #tpu.memory_space<vmem>>) attributes {dimension_semantics = [#tpu.dimension_semantics<parallel>, #tpu.dimension_semantics<arbitrary>], iteration_bounds = array<i64: 2, 1>, scalar_prefetch = 0 : i64, scratch_operands = 2 : i64, tpu.core_type = #tpu.core_type<tc>, window_params = [{transform_indices = @transform_0, window_bounds = array<i64: 1, 128, 128>}, {pipeline_mode = #tpu.pipeline_mode<synchronous>, transform_indices = @transform_1, window_bounds = array<i64: 128, 128>}, {pipeline_mode = #tpu.pipeline_mode<synchronous>, transform_indices = @transform_2, window_bounds = array<i64: 128, 256>}, {pipeline_mode = #tpu.pipeline_mode<synchronous>, transform_indices = @transform_3, window_bounds = array<i64: 1, 256>}, {transform_indices = @transform_4, window_bounds = array<i64: 1, 8, 8>}]} {
    %c0_i32 = arith.constant 0 : i32
    %0 = arith.cmpi eq, %arg1, %c0_i32 : i32
    %1 = arith.extui %0 : i1 to i32
    %c0_i32_0 = arith.constant 0 : i32
    %2 = arith.cmpi ne, %1, %c0_i32_0 : i32
    scf.if %2 {
      %c0_12 = arith.constant 0 : index
      %c0_13 = arith.constant 0 : index
      %c0_14 = arith.constant 0 : index
      %35 = vector.load %arg2[%c0_12, %c0_13, %c0_14] : memref<1x128x128xf32, #tpu.memory_space<vmem>>, vector<1x128x128xf32>
      %36 = vector.shape_cast %35 : vector<1x128x128xf32> to vector<128x128xf32>
      %cst_15 = arith.constant 11.3137083 : f32
      %37 = vector.broadcast %cst_15 : f32 to vector<128x128xf32>
      %38 = arith.mulf %36, %37 : vector<128x128xf32>
      %c0_16 = arith.constant 0 : index
      %c0_17 = arith.constant 0 : index
      %39 = vector.load %arg3[%c0_16, %c0_17] : memref<128x128xf32, #tpu.memory_space<vmem>>, vector<128x128xf32>
      %40 = arith.addf %38, %39 : vector<128x128xf32>
      %c0_18 = arith.constant 0 : index
      %c0_19 = arith.constant 0 : index
      %41 = vector.load %arg4[%c0_18, %c0_19] : memref<128x256xf32, #tpu.memory_space<vmem>>, vector<128x256xf32>
      %cst_20 = arith.constant dense<0.000000e+00> : vector<128x256xf32>
      %42 = tpu.matmul %40, %41, %cst_20 {dimension_numbers = #tpu.dot_dimension_numbers<[1], [0], [0], [1], [0, 0, 1, 1], [], []>} : vector<128x128xf32>, vector<128x256xf32>, vector<128x256xf32> -> vector<128x256xf32>
      %c0_21 = arith.constant 0 : index
      %c0_22 = arith.constant 0 : index
      %43 = vector.load %arg5[%c0_21, %c0_22] : memref<1x256xf32, #tpu.memory_space<vmem>>, vector<1x256xf32>
      %44 = vector.broadcast %43 : vector<1x256xf32> to vector<128x256xf32>
      %45 = arith.addf %42, %44 : vector<128x256xf32>
      %46 = vector.extract_strided_slice %45 {offsets = [0, 0], sizes = [128, 128], strides = [1, 1]} : vector<128x256xf32> to vector<128x128xf32>
      %cst_23 = arith.constant 0.0883883461 : f32
      %47 = vector.broadcast %cst_23 : f32 to vector<128x128xf32>
      %48 = arith.mulf %46, %47 : vector<128x128xf32>
      %c0_24 = arith.constant 0 : index
      %c0_25 = arith.constant 0 : index
      %49 = vector.load %arg7[%c0_24, %c0_25] : memref<128x128xf32, #tpu.memory_space<vmem>>, vector<128x128xf32>
      tpu.vector_store %arg7[%c0_24, %c0_25], %48 {strides = array<i32>} : memref<128x128xf32, #tpu.memory_space<vmem>>, vector<128x128xf32>,
      %50 = vector.extract_strided_slice %45 {offsets = [0, 128], sizes = [128, 128], strides = [1, 1]} : vector<128x256xf32> to vector<128x128xf32>
      %c0_26 = arith.constant 0 : index
      %c0_27 = arith.constant 0 : index
      %51 = vector.load %arg8[%c0_26, %c0_27] : memref<128x128xf32, #tpu.memory_space<vmem>>, vector<128x128xf32>
      tpu.vector_store %arg8[%c0_26, %c0_27], %50 {strides = array<i32>} : memref<128x128xf32, #tpu.memory_space<vmem>>, vector<128x128xf32>,
    } else {
    }
    %c8_i32 = arith.constant 8 : i32
    %3 = arith.muli %arg1, %c8_i32 : i32
    %4 = tpu.assume_multiple %3, 8 : i32
    %5 = arith.index_cast %4 : i32 to index
    %c0 = arith.constant 0 : index
    %6 = vector.load %arg7[%5, %c0] : memref<128x128xf32, #tpu.memory_space<vmem>>, vector<8x128xf32>
    %c0_1 = arith.constant 0 : index
    %c0_2 = arith.constant 0 : index
    %7 = vector.load %arg8[%c0_1, %c0_2] : memref<128x128xf32, #tpu.memory_space<vmem>>, vector<128x128xf32>
    %cst = arith.constant dense<0.000000e+00> : vector<8x128xf32>
    %8 = tpu.matmul %6, %7, %cst {dimension_numbers = #tpu.dot_dimension_numbers<[1], [1], [0], [0], [0, 0, 1, 0], [], []>} : vector<8x128xf32>, vector<128x128xf32>, vector<8x128xf32> -> vector<8x128xf32>
    %9 = tpu.iota {dimensions = array<i32: 1>} : vector<1x128xi32>
    %c8_i32_3 = arith.constant 8 : i32
    %10 = vector.broadcast %c8_i32_3 : i32 to vector<1x128xi32>
    %11 = arith.cmpi slt, %9, %10 : vector<1x128xi32>
    %cst_4 = arith.constant 0.000000e+00 : f32
    %cst_5 = arith.constant -1.000000e+30 : f32
    %12 = vector.broadcast %cst_4 : f32 to vector<1x128xf32>
    %13 = vector.broadcast %cst_5 : f32 to vector<1x128xf32>
    %14 = arith.select %11, %12, %13 : vector<1x128xi1>, vector<1x128xf32>
    %15 = vector.broadcast %14 : vector<1x128xf32> to vector<8x128xf32>
    %16 = arith.addf %8, %15 : vector<8x128xf32>
    %cst_6 = arith.constant dense<0xFF800000> : vector<8xf32>
    %17 = vector.multi_reduction <maximumf>, %16, %cst_6 [1] : vector<8x128xf32> to vector<8xf32>
    %18 = vector.shape_cast %17 : vector<8xf32> to vector<8x1xf32>
    %19 = vector.broadcast %18 : vector<8x1xf32> to vector<8x128xf32>
    %20 = arith.subf %16, %19 : vector<8x128xf32>
    %21 = math.exp %20 : vector<8x128xf32>
    %cst_7 = arith.constant dense<0.000000e+00> : vector<8xf32>
    %22 = vector.multi_reduction <add>, %21, %cst_7 [1] : vector<8x128xf32> to vector<8xf32>
    %23 = vector.shape_cast %22 : vector<8xf32> to vector<8x1xf32>
    %24 = tpu.reciprocal %23 {approx = true} : vector<8x1xf32> -> vector<8x1xf32>
    %25 = arith.mulf %23, %24 : vector<8x1xf32>
    %cst_8 = arith.constant 2.000000e+00 : f32
    %26 = vector.broadcast %cst_8 : f32 to vector<8x1xf32>
    %27 = arith.subf %26, %25 : vector<8x1xf32>
    %28 = arith.mulf %24, %27 : vector<8x1xf32>
    %29 = vector.broadcast %28 : vector<8x1xf32> to vector<8x128xf32>
    %30 = arith.mulf %21, %29 : vector<8x128xf32>
    %31 = vector.extract_strided_slice %30 {offsets = [0, 0], sizes = [8, 8], strides = [1, 1]} : vector<8x128xf32> to vector<8x8xf32>
    %c0_9 = arith.constant 0 : index
    %c0_10 = arith.constant 0 : index
    %c0_11 = arith.constant 0 : index
    %32 = vector.load %arg6[%c0_9, %c0_10, %c0_11] : memref<1x8x8xf32, #tpu.memory_space<vmem>>, vector<1x8x8xf32>
    %33 = vector.shape_cast %32 : vector<1x8x8xf32> to vector<8x8xf32>
    %34 = vector.shape_cast %31 : vector<8x8xf32> to vector<1x8x8xf32>
    tpu.vector_store %arg6[%c0_9, %c0_10, %c0_11], %34 {strides = array<i32>} : memref<1x8x8xf32, #tpu.memory_space<vmem>>, vector<1x8x8xf32>,
    return
  }
  func.func @transform_0(%arg0: i32, %arg1: i32) -> (i32, i32, i32) {
    %c0_i32 = arith.constant 0 : i32
    %c0_i32_0 = arith.constant 0 : i32
    %c0_i32_1 = arith.constant 0 : i32
    return %arg0, %c0_i32, %c0_i32_0 : i32, i32, i32
  }
  func.func @transform_1(%arg0: i32, %arg1: i32) -> (i32, i32) {
    %c0_i32 = arith.constant 0 : i32
    %c0_i32_0 = arith.constant 0 : i32
    %c0_i32_1 = arith.constant 0 : i32
    return %c0_i32, %c0_i32_0 : i32, i32
  }
  func.func @transform_2(%arg0: i32, %arg1: i32) -> (i32, i32) {
    %c0_i32 = arith.constant 0 : i32
    %c0_i32_0 = arith.constant 0 : i32
    %c0_i32_1 = arith.constant 0 : i32
    return %c0_i32, %c0_i32_0 : i32, i32
  }
  func.func @transform_3(%arg0: i32, %arg1: i32) -> (i32, i32) {
    %c0_i32 = arith.constant 0 : i32
    %c0_i32_0 = arith.constant 0 : i32
    %c0_i32_1 = arith.constant 0 : i32
    return %c0_i32, %c0_i32_0 : i32, i32
  }
  func.func @transform_4(%arg0: i32, %arg1: i32) -> (i32, i32, i32) {
    %c0_i32 = arith.constant 0 : i32
    %c0_i32_0 = arith.constant 0 : i32
    return %arg0, %arg1, %c0_i32 : i32, i32, i32
  }
}

</mosaic_0001>

<bundles_post_ra>
// kernel: tpu_custom_call.1
= control target key start
LH: loop header
LB: loop body
LE: loop exit
PB: predicated region body
PF: predicated region fallthrough
CT: control target
= control target key end

     0   :  { %s1307_s0 = inlined_call_operand.hbm [shape: f32[2,128,128], index: 0, kind: input, shape index: {}]   ;;  %s1308_s1 = inlined_call_operand.hbm [shape: f32[128,128], index: 1, kind: input, shape index: {}]   ;;  %s1309_s2 = inlined_call_operand.hbm [shape: f32[128,256], index: 2, kind: input, shape index: {}]   ;;  %s1310_s3 = inlined_call_operand.vmem [shape: f32[1,256], index: 3, kind: input, shape index: {}]   ;;  %s1311_s4 = inlined_call_operand.hbm [shape: f32[2,8,8], index: 4, kind: output, shape index: {}]  }
   0x1   :  { %1313 = sst [smem:[#allocation14_spill]] %s1308_s1 }
   0x2   :  { %9 = vsyncpa [#allocation5], 0 }
   0x3   :  { %11 = vsyncpa [#allocation5 + $0x1], 0 }
   0x4   :  { %12 = vsyncpa [#allocation8], 0 }
   0x5   :  { %13 = vsyncpa [#allocation6], 0 }
   0x6   :  { %15 = vsyncpa [#allocation6 + $0x1], 0  ;;  %s1060_s15 = smov 0   ;;  %s1062_s16 = smov 0  }
   0x7   :  { %s1064_s17 = smov 0   ;;  %s1066_s18 = smov 0  }
   0x8   :  { %s1068_s19 = smov 0   ;;  %s1070_s20 = smov 0  }
   0x9 LB: > { %s723_s21 = sadd.s32 4294967295, %s1026_s20   ;;  %s724_s22 = sadd.s32 4294967294, %s1026_s20   ;;  %s1026_s20 = sphi %s1070_s20, %s21_s20   ;;  %s1022_s19 = sphi %s1068_s19, %s1325_s19   ;;  %s1018_s18 = sphi %s1066_s18, %s1324_s18   ;;  %s1014_s17 = sphi %s1064_s17, %s1323_s17   ;;  %s1010_s16 = sphi %s1062_s16, %s1322_s16   ;;  %s1006_s15 = sphi %s1060_s15, %s1321_s15  }
   0xa   : > { %p53_p0 = scmp.ne.s32.totalorder %s1010_s16, %s1006_s15  ;;  %p1096_p1 = scmp.eq.s32.totalorder %s723_s21, 0 }
   0xb   : > { %p148_p2 = scmp.eq.s32.totalorder %s724_s22, 1  ;;  %p725_p4 = scmp.ge.s32.totalorder %s1026_s20, 1 }
   0xc   : > { %p1102_p3 = por %p1096_p1, %p53_p0  ;;  %p155_p6 = scmp.lt.s32.totalorder %s1026_s20, 3 }
   0xd   : > { %p1107_p5 = por %p148_p2, %p53_p0  ;;  %s1317_s1 = sld [smem:[#allocation14_spill]] }
   0xe   : > { %p1115_p7 = pnand %p725_p4, %p155_p6  ;;  %s1028_s30 = smov [#allocation7]  }
   0xf   : > { %s168_s5 = sshll.u32 %s1028_s30, 4  ;;  %p728_p10 = scmp.ge.s32.totalorder %s1026_s20, 2  ;;  %s169_s5 = int_to_ptr.vmem [resolvable:$true] %s168_s5 }
  0x10   : > { %p770_p8 = pneg %p1115_p7  ;;  %s180_s8 = sshll.u32 %s1309_s2, 4  ;;  %s181_s8 = int_to_ptr.hbm [resolvable:$true] %s180_s8 }
  0x11   : > { %s1312_s9 = smov 128   ;;  %s1030_s10 = smov 8  }
  0x12   : > { %p771_p9 = pnand %p770_p8, %p1096_p1  ;;  %s1031_s11 = smov [#allocation9]  }
  0x13   : > { %s166_s28 = sshll.u32 %s1317_s1, 4  ;;  %s182_s12 = sshll.u32 %s1031_s11, 4  ;;  %s167_s28 = int_to_ptr.hbm [resolvable:$true] %s166_s28  ;;  %s183_s12 = int_to_ptr.vmem [resolvable:$true] %s182_s12 }
  0x14   : > { %773 = dma.hbm_to_vmem [thread:$0]  (!%p771_p9), %s167_s28, 2048, %s169_s5, [#allocation8], %s1312_s9, %s1312_s9, %s1030_s10  }
  0x15   : > { %s1032_s13 = smov 256   ;;  %s1033_s14 = smov 16  }
  0x16   : > { %776 = dma.hbm_to_vmem [thread:$0]  (!%p771_p9), %s181_s8, 4096, %s183_s12, [#allocation8], %s1032_s13, %s1032_s13, %s1033_s14  }
  0x17   : > { %p142_p11 = scmp.eq.s32.totalorder %s723_s21, 1  ;;  %s33_s22 = sadd.s32 1, %s1022_s19 }
  0x18   : > { %p35_p12 = scmp.ge.s32.totalorder %s33_s22, 2  ;;  %s40_s26 = sadd.s32 1, %s1014_s17 }
  0x19   : > { %p47_p13 = scmp.ne.s32.totalorder %s1014_s17, %s1010_s16  ;;  %p48_p0 = scmp.eq.s32.totalorder %s1026_s20, 0 }
  0x1a   : > { %s1327_s22 = smov (%p35_p12, %s33_s22), 0  ;;  %p787_p4 = scmp.lt.s32.totalorder %s1026_s20, 2 }
  0x1b   : > { %p1139_p2 = por %p142_p11, %p47_p13  ;;  %s37_s28 = ssub.s32 %s1022_s19, %s1327_s22 }
  0x1c   : > { %s199_s30 = sand.u32 1, %s1014_s17   ;;  %p38_p6 = scmp.eq.s32.totalorder %s37_s28, 0 }
  0x1d   : > { %p49_p8 = por %p48_p0, %p47_p13  ;;  %s729_s5 = sshll.u32 %s199_s30, 7 }
  0x1e   : > { %s741_s21 = sshll.u32 %s1022_s19, 7  ;;  %s203_s13 = scalar_lea.vmem [#allocation4], %s729_s5 }
  0x1f   : > { %s1149_s6 = scalar_select %p38_p6, %s1014_s17, %s40_s26  }
  0x20   : > { %s208_s11 = scalar_lea.hbm %s1307_s0, %s741_s21  ;;  %s211_s14 = sshll.u32 %s203_s13, 4  ;;  %s212_s14 = int_to_ptr.vmem [resolvable:$true] %s211_s14 }
  0x21   : > { %s209_s12 = sshll.u32 %s208_s11, 4  ;;  %p778_p9 = pnand %p787_p4, %p49_p8  ;;  %s210_s12 = int_to_ptr.hbm [resolvable:$true] %s209_s12 }
  0x22   : > { %s200_s9 = scalar_lea.sflag [#allocation5], %s199_s30  ;;  %s1320_s1 = smov 128  }
  0x23   : > { %780 = dma.hbm_to_vmem [thread:$0]  (!%p778_p9), %s210_s12, 2048, %s212_s14, %s200_s9, %s1320_s1, %s1320_s1, %s1030_s10  }
  0x24   : > { %223 = sbr.rel (%p1115_p7) target bundleno = 782 (0x30e), region = 36  ;;  %s1162_s26 = sand.u32 (!%p1115_p7), 1, %s1010_s16  }
  0x25   : > { %s733_s28 = sshll.u32 (!%p1115_p7), %s1162_s26, 7  ;;  %s226_s5 = scalar_lea.sflag (!%p1115_p7), [#allocation5], %s1162_s26 }
  0x26   : > { %s1166_s21 = scalar_lea.vmem (!%p1115_p7), [#allocation4], %s733_s28 }
  0x29   : > { %993 = dma.done.wait (%p1102_p3), %s226_s5, 2048  }
  0x2a   : > { %995 = vsyncadd (%p1102_p3), %s226_s5, 4294965248 }
  0x2b   : > { %997 = dma.done.wait (%p1096_p1), [#allocation8], 6144  }
  0x2c   : > { %999 = vsyncadd (%p1096_p1), [#allocation8], 4294961152  ;;  %v364_v0 = vld [vmem:[#allocation9 + $0xf8] sm:$0xff]  ;;  %v362_v1 = vld [vmem:[#allocation9 + $0xe8] sm:$0xff]  ;;  %s736_s24 = sshll.u32 %s1162_s26, 3  ;;  %s738_s29 = sshll.u32 %s1018_s18, 3 }
  0x2d   : > { %436 = vmatpush.msra.mxu1 %v364_v0  ;;  %v360_v2 = vld [vmem:[#allocation9 + $0xd8] sm:$0xff]  ;;  %v358_v3 = vld [vmem:[#allocation9 + $0xc8] sm:$0xff]  ;;  %v269_v12 = vld [vmem:[%s1166_s21] sm:$0xff]  ;;  %s618_s30 = scalar_lea.hbm %s1311_s4, %s738_s29  ;;  %s264_s7 = scalar_lea.vmem [#allocation10], %s736_s24  ;;  %vm604_vm1 = vcmask 64512  }
  0x2e   : > { %v356_v4 = vld [vmem:[#allocation9 + $0xb8] sm:$0xff]  ;;  %v354_v5 = vld [vmem:[#allocation9 + $0xa8] sm:$0xff]  ;;  %v285_v15 = vmul.f32 11.313708, %v269_v12  ;;  %v301_v16 = vld [vmem:[#allocation7] sm:$0xff]  ;;  %s620_s8 = sshll.u32 %s264_s7, 4  ;;  %s621_s8 = int_to_ptr.vmem [resolvable:$true] %s620_s8 }
  0x2f   : > { %437 = vmatpush.msra.mxu1 %v362_v1  ;;  %v352_v6 = vld [vmem:[#allocation9 + $0x98] sm:$0xff]  ;;  %v350_v7 = vld [vmem:[#allocation9 + $0x88] sm:$0xff]  ;;  %v271_v24 = vld [vmem:[%s1166_s21 + $0x10] sm:$0xff]  ;;  %s622_s11 = sshll.u32 %s618_s30, 4  ;;  %s607_s12 = scalar_lea.sflag [#allocation6], %s1162_s26  ;;  %s623_s11 = int_to_ptr.hbm [resolvable:$true] %s622_s11 }
  0x30   : > { %v348_v8 = vld [vmem:[#allocation9 + $0x78] sm:$0xff]  ;;  %v346_v9 = vld [vmem:[#allocation9 + $0x68] sm:$0xff]  ;;  %v1177_v19 = vadd.f32 %v301_v16, %v285_v15  ;;  %v287_v25 = vmul.f32 11.313708, %v271_v24  ;;  %v303_v26 = vld [vmem:[#allocation7 + $0x10] sm:$0xff]  ;;  %s954_s13 = sshra.s32 %s623_s11, 4  ;;  %s955_s13 = int_to_ptr.hbm [resolvable:$true] %s954_s13 }
  0x31   : > { %438 = vmatpush.msra.mxu1 %v360_v2  ;;  %v344_v10 = vld [vmem:[#allocation9 + $0x58] sm:$0xff]  ;;  %v342_v11 = vld [vmem:[#allocation9 + $0x48] sm:$0xff]  ;;  %v273_v32 = vld [vmem:[%s1166_s21 + $0x20] sm:$0xff]  ;;  %s956_s18 = scalar_lea.hbm %s955_s13, 8  ;;  %s960_s5 = scalar_lea.hbm %s1311_s4, 16 }
  0x32   : > { %v340_v13 = vld [vmem:[#allocation9 + $0x38] sm:$0xff]  ;;  %v338_v14 = vld [vmem:[#allocation9 + $0x28] sm:$0xff]  ;;  %v1185_v27 = vadd.f32 %v303_v26, %v287_v25  ;;  %v289_v33 = vmul.f32 11.313708, %v273_v32  ;;  %v305_v34 = vld [vmem:[#allocation7 + $0x20] sm:$0xff]  ;;  %p957_p1 = scmp.ne.s32.totalorder %s955_s13, %s956_s18  ;;  %p961_p11 = scmp.lt.s32.totalorder %s955_s13, %s1311_s4 }
  0x33   : > { %439 = vmatpush.msra.mxu1 %v358_v3  ;;  %v336_v17 = vld [vmem:[#allocation9 + $0x18] sm:$0xff]  ;;  %v334_v18 = vld [vmem:[#allocation9 + $0x8] sm:$0xff]  ;;  %v275_v40 = vld [vmem:[%s1166_s21 + $0x30] sm:$0xff]  ;;  %p962_p12 = scmp.lt.s32.totalorder %s960_s5, %s956_s18 }
  0x34   : > { %v270_v20 = vld [vmem:[%s1166_s21 + $0x8] sm:$0xff]  ;;  %v272_v28 = vld [vmem:[%s1166_s21 + $0x18] sm:$0xff]  ;;  %v1193_v35 = vadd.f32 %v305_v34, %v289_v33  ;;  %v291_v41 = vmul.f32 11.313708, %v275_v40  ;;  %v307_v42 = vld [vmem:[#allocation7 + $0x30] sm:$0xff]  ;;  %p958_p3 = pnand %p957_p1, %p1139_p2 }
  0x35   : > { %440 = vmatpush.msra.mxu1 %v356_v4  ;;  %v286_v21 = vmul.f32 11.313708, %v270_v20  ;;  %v302_v22 = vld [vmem:[#allocation7 + $0x8] sm:$0xff]  ;;  %v288_v29 = vmul.f32 11.313708, %v272_v28  ;;  %v304_v30 = vld [vmem:[#allocation7 + $0x18] sm:$0xff]  ;;  %p963_p13 = por %p962_p12, %p961_p11 }
  0x36   : > { %v274_v36 = vld [vmem:[%s1166_s21 + $0x28] sm:$0xff]  ;;  %v1201_v43 = vadd.f32 %v307_v42, %v291_v41  ;;  %v276_v44 = vld [vmem:[%s1166_s21 + $0x38] sm:$0xff]  ;;  %v277_v48 = vld [vmem:[%s1166_s21 + $0x40] sm:$0xff]  ;;  %p959_p7 = pneg %p958_p3 }
  0x37   : > { %441 = vmatpush.msra.mxu1 %v354_v5  ;;  %v1181_v23 = vadd.f32 %v302_v22, %v286_v21  ;;  %v1189_v31 = vadd.f32 %v304_v30, %v288_v29  ;;  %v290_v37 = vmul.f32 11.313708, %v274_v36  ;;  %v306_v38 = vld [vmem:[#allocation7 + $0x28] sm:$0xff]  ;;  %v292_v45 = vmul.f32 11.313708, %v276_v44  ;;  %v308_v46 = vld [vmem:[#allocation7 + $0x38] sm:$0xff] }
  0x38   : > { %v293_v49 = vmul.f32 11.313708, %v277_v48  ;;  %v309_v50 = vld [vmem:[#allocation7 + $0x40] sm:$0xff]  ;;  %v278_v52 = vld [vmem:[%s1166_s21 + $0x48] sm:$0xff]  ;;  %v279_v56 = vld [vmem:[%s1166_s21 + $0x50] sm:$0xff]  ;;  %p964_p0 = pnand %p963_p13, %p959_p7 }
  0x39   : > { %442 = vmatpush.msra.mxu1 %v352_v6  ;;  %v1197_v39 = vadd.f32 %v306_v38, %v290_v37  ;;  %v1205_v47 = vadd.f32 %v308_v46, %v292_v45  ;;  %v294_v53 = vmul.f32 11.313708, %v278_v52  ;;  %v310_v54 = vld [vmem:[#allocation7 + $0x48] sm:$0xff]  ;;  %v295_v57 = vmul.f32 11.313708, %v279_v56  ;;  %v311_v58 = vld [vmem:[#allocation7 + $0x50] sm:$0xff] }
  0x3a   : > { %v1209_v51 = vadd.f32 %v309_v50, %v293_v49  ;;  %v280_v60 = vld [vmem:[%s1166_s21 + $0x58] sm:$0xff]  ;;  %v281_v0 = vld [vmem:[%s1166_s21 + $0x60] sm:$0xff]  ;;  %v282_v4 = vld [vmem:[%s1166_s21 + $0x68] sm:$0xff] }
  0x3b   : > { %443 = vmatpush.msra.mxu1 %v350_v7  ;;  %v1213_v55 = vadd.f32 %v310_v54, %v294_v53  ;;  %v1217_v59 = vadd.f32 %v311_v58, %v295_v57  ;;  %v296_v61 = vmul.f32 11.313708, %v280_v60  ;;  %v312_v62 = vld [vmem:[#allocation7 + $0x58] sm:$0xff]  ;;  %v297_v1 = vmul.f32 11.313708, %v281_v0  ;;  %v313_v2 = vld [vmem:[#allocation7 + $0x60] sm:$0xff] }
  0x3c   : > { %v298_v5 = vmul.f32 11.313708, %v282_v4  ;;  %v314_v6 = vld [vmem:[#allocation7 + $0x68] sm:$0xff]  ;;  %v284_v12 = vld [vmem:[%s1166_s21 + $0x78] sm:$0xff]  ;;  %v363_v16 = vld [vmem:[#allocation9 + $0xf0] sm:$0xff] }
  0x3d   : > { %444 = vmatpush.msra.mxu1 %v348_v8  ;;  %v1221_v63 = vadd.f32 %v312_v62, %v296_v61  ;;  %v1225_v3 = vadd.f32 %v313_v2, %v297_v1  ;;  %v283_v8 = vld [vmem:[%s1166_s21 + $0x70] sm:$0xff]  ;;  %371 = vmatpush.msra.mxu0 %v363_v16  ;;  %v357_v20 = vld [vmem:[#allocation9 + $0xc0] sm:$0xff] }
  0x3e   : > { %v1229_v7 = vadd.f32 %v314_v6, %v298_v5  ;;  %742 = vmatpush.msra.mxu3 %v363_v16  ;;  %v355_v22 = vld [vmem:[#allocation9 + $0xb0] sm:$0xff]  ;;  %v353_v24 = vld [vmem:[#allocation9 + $0xa0] sm:$0xff] }
  0x3f   : > { %445 = vmatpush.msra.mxu1 %v346_v9  ;;  %v299_v9 = vmul.f32 11.313708, %v283_v8  ;;  %v351_v25 = vld [vmem:[#allocation9 + $0x90] sm:$0xff]  ;;  %v349_v26 = vld [vmem:[#allocation9 + $0x80] sm:$0xff] }
  0x40   : > { %v347_v29 = vld [vmem:[#allocation9 + $0x70] sm:$0xff]  ;;  %v345_v30 = vld [vmem:[#allocation9 + $0x60] sm:$0xff] }
  0x41   : > { %446 = vmatpush.msra.mxu1 %v344_v10  ;;  %v315_v10 = vld [vmem:[#allocation7 + $0x70] sm:$0xff]  ;;  %v341_v33 = vld [vmem:[#allocation9 + $0x40] sm:$0xff] }
  0x42   : > { %v343_v32 = vld [vmem:[#allocation9 + $0x50] sm:$0xff]  ;;  %v337_v37 = vld [vmem:[#allocation9 + $0x20] sm:$0xff] }
  0x43   : > { %447 = vmatpush.msra.mxu1 %v342_v11  ;;  %v1233_v11 = vadd.f32 %v315_v10, %v299_v9  ;;  %v339_v36 = vld [vmem:[#allocation9 + $0x30] sm:$0xff]  ;;  %v333_v40 = vld [vmem:[#allocation9] sm:$0xff] }
  0x44   : > { %v335_v38 = vld [vmem:[#allocation9 + $0x10] sm:$0xff] }
  0x45   : > { %448 = vmatpush.msra.mxu1 %v340_v13  ;;  %v300_v13 = vmul.f32 11.313708, %v284_v12 }
  0x47   : > { %449 = vmatpush.msra.mxu1 %v338_v14  ;;  %v316_v14 = vld [vmem:[#allocation7 + $0x78] sm:$0xff] }
  0x48   : > { %v1237_v15 = vadd.f32 %v316_v14, %v300_v13 }
  0x49   : > { %450 = vmatpush.msra.mxu1 %v336_v17  ;;  %v361_v17 = vld [vmem:[#allocation9 + $0xe0] sm:$0xff] }
  0x4a   : > { %372 = vmatpush.msra.mxu0 %v361_v17  ;;  %743 = vmatpush.msra.mxu3 %v361_v17 }
  0x4b   : > { %451 = vmatpush.msra.mxu1 %v334_v18  ;;  %v359_v18 = vld [vmem:[#allocation9 + $0xd0] sm:$0xff] }
  0x4c   : > { %452 = vmatmul.f32.vlgmr.msra.gmra.mxu1 %v1177_v19  ;;  %373 = vmatpush.msra.mxu0 %v359_v18 }
  0x4d   : > { %744 = vmatpush.msra.mxu3 %v359_v18 }
  0x4e   : > { %374 = vmatpush.msra.mxu0 %v357_v20 }
  0x4f   : > { %745 = vmatpush.msra.mxu3 %v357_v20 }
  0x50   : > { %375 = vmatpush.msra.mxu0 %v355_v22 }
  0x51   : > { %746 = vmatpush.msra.mxu3 %v355_v22 }
  0x52   : > { %376 = vmatpush.msra.mxu0 %v353_v24 }
  0x53   : > { %747 = vmatpush.msra.mxu3 %v353_v24  ;;  %v568_v24 = vlaneseq }
  0x54   : > { %455 = vmatmul.f32.gmra.mxu1 %v1181_v23  ;;  %377 = vmatpush.msra.mxu0 %v351_v25 }
  0x55   : > { %748 = vmatpush.msra.mxu3 %v351_v25  ;;  %v569_v25 = vand.u32 127, %v568_v24 }
  0x56   : > { %378 = vmatpush.msra.mxu0 %v349_v26 }
  0x57   : > { %749 = vmatpush.msra.mxu3 %v349_v26  ;;  %vm570_vm0 = vcmp.lt.s32.totalorder %v569_v25, 8  ;;  %v1034_v26 = vmov -1e+30  }
  0x58   : > { %379 = vmatpush.msra.mxu0 %v347_v29 }
  0x59   : > { %750 = vmatpush.msra.mxu3 %v347_v29 }
  0x5a   : > { %380 = vmatpush.msra.mxu0 %v345_v30 }
  0x5b   : > { %751 = vmatpush.msra.mxu3 %v345_v30 }
  0x5c   : > { %458 = vmatmul.f32.gmra.mxu1 %v1185_v27  ;;  %381 = vmatpush.msra.mxu0 %v343_v32 }
  0x5d   : > { %752 = vmatpush.msra.mxu3 %v343_v32 }
  0x5e   : > { %382 = vmatpush.msra.mxu0 %v341_v33 }
  0x5f   : > { %753 = vmatpush.msra.mxu3 %v341_v33 }
  0x60   : > { %383 = vmatpush.msra.mxu0 %v339_v36 }
  0x61   : > { %754 = vmatpush.msra.mxu3 %v339_v36 }
  0x62   : > { %384 = vmatpush.msra.mxu0 %v337_v37 }
  0x63   : > { %755 = vmatpush.msra.mxu3 %v337_v37 }
  0x64   : > { %461 = vmatmul.f32.gmra.mxu1 %v1189_v31  ;;  %385 = vmatpush.msra.mxu0 %v335_v38 }
  0x65   : > { %756 = vmatpush.msra.mxu3 %v335_v38 }
  0x66   : > { %386 = vmatpush.msra.mxu0 %v333_v40 }
  0x67   : > { %387 = vmatmul.f32.vlgmr.msra.gmra.mxu0 %v1177_v19  ;;  %757 = vmatpush.msra.mxu3 %v333_v40 }
  0x68   : > { %417 = vmatmul.f32.vlgmr.msra.gmra.mxu3 %v1217_v59 }
  0x6c   : > { %464 = vmatmul.f32.gmra.mxu1 %v1193_v35 }
  0x6f   : > { %390 = vmatmul.f32.gmra.mxu0 %v1181_v23 }
  0x70   : > { %420 = vmatmul.f32.gmra.mxu3 %v1221_v63 }
  0x74   : > { %467 = vmatmul.f32.gmra.mxu1 %v1197_v39 }
  0x77   : > { %393 = vmatmul.f32.gmra.mxu0 %v1185_v27 }
  0x78   : > { %423 = vmatmul.f32.gmra.mxu3 %v1225_v3 }
  0x7c   : > { %470 = vmatmul.f32.gmra.mxu1 %v1201_v43 }
  0x7f   : > { %396 = vmatmul.f32.gmra.mxu0 %v1189_v31 }
  0x80   : > { %426 = vmatmul.f32.gmra.mxu3 %v1229_v7 }
  0x84   : > { %473 = vmatmul.f32.gmra.mxu1 %v1205_v47 }
  0x87   : > { %399 = vmatmul.f32.gmra.mxu0 %v1193_v35 }
  0x88   : > { %429 = vmatmul.f32.gmra.mxu3 %v1233_v11 }
  0x8c   : > { %476 = vmatmul.f32.gmra.mxu1 %v1209_v51 }
  0x8f   : > { %402 = vmatmul.f32.gmra.mxu0 %v1197_v39  ;;  %v365_v39 = vld [vmem:[%s1310_s3] sm:$0x3] }
  0x90   : > { %432 = vmatmul.f32.gmra.mxu3 %v1237_v15  ;;  %v368_v50 = vperm.slane %v365_v39, 1 }
  0x94   : > { %479 = vmatmul.f32.gmra.mxu1 %v1213_v55 }
  0x97   : > { %405 = vmatmul.f32.gmra.mxu0 %v1201_v43 }
  0x9c   : > { %482 = vmatmul.f32.gmra.mxu1 %v1217_v59 }
  0x9f   : > { %408 = vmatmul.f32.gmra.mxu0 %v1205_v47 }
  0xa4   : > { %485 = vmatmul.f32.gmra.mxu1 %v1221_v63 }
  0xa7   : > { %411 = vmatmul.f32.gmra.mxu0 %v1209_v51 }
  0xac   : > { %488 = vmatmul.f32.gmra.mxu1 %v1225_v3 }
  0xaf   : > { %414 = vmatmul.f32.gmra.mxu0 %v1213_v55 }
  0xb4   : > { %491 = vmatmul.f32.gmra.mxu1 %v1229_v7  ;;  %v367_v7 = vperm.slane %v365_v39, 0 }
  0xbc   : > { %494 = vmatmul.f32.gmra.mxu1 %v1233_v11 }
  0xc4   : > { %497 = vmatmul.f32.gmra.mxu1 %v1237_v15 }
  0xc9   : > { %v1240_v21 = vpop.f32.mrf.mxu1 }
  0xca   : > { %v454_v11 = vadd.f32 %v1240_v21, %v368_v50 }
  0xd1   : > { %v1242_v28 = vpop.f32.mrf.mxu1 }
  0xd2   : > { %v457_v8 = vadd.f32 %v1242_v28, %v368_v50  ;;  %v571_v28 = vsel %vm570_vm0, 0.0, %v1034_v26 }
  0xd9   : > { %v1244_v34 = vpop.f32.mrf.mxu1 }
  0xda   : > { %v460_v5 = vadd.f32 %v1244_v34, %v368_v50 }
  0xe1   : > { %v462_v41 = vpop.f32.mrf.mxu1 }
  0xe2   : > { %v463_v3 = vadd.f32 %v462_v41, %v368_v50 }
  0xe4   : > { %v388_v58 = vpop.f32.mrf.mxu0 }
  0xe5   : > { %v389_v9 = vadd.f32 %v388_v58, %v367_v7 }
  0xe7   : > { %v501_v13 = vmul.f32 0.088388346, %v389_v9 }
  0xe9   : > { %v465_v42 = vpop.f32.mrf.mxu1 }
  0xea   : > { %v466_v1 = vadd.f32 %v465_v42, %v368_v50 }
  0xeb   : > { %v418_v60 = vpop.f32.mrf.mxu3 }
  0xec   : > { %v391_v62 = vpop.f32.mrf.mxu0 }
  0xf1   : > { %v468_v44 = vpop.f32.mrf.mxu1 }
  0xf2   : > { %v469_v63 = vadd.f32 %v468_v44, %v368_v50 }
  0xf3   : > { %v421_v0 = vpop.f32.mrf.mxu3 }
  0xf4   : > { %v394_v2 = vpop.f32.mrf.mxu0 }
  0xf9   : > { %v471_v45 = vpop.f32.mrf.mxu1 }
  0xfa   : > { %v472_v61 = vadd.f32 %v471_v45, %v368_v50 }
  0xfb   : > { %v424_v4 = vpop.f32.mrf.mxu3 }
  0xfc   : > { %v397_v6 = vpop.f32.mrf.mxu0 }
 0x101   : > { %v474_v46 = vpop.f32.mrf.mxu1 }
 0x102   : > { %v475_v59 = vadd.f32 %v474_v46, %v368_v50 }
 0x103   : > { %v427_v10 = vpop.f32.mrf.mxu3 }
 0x104   : > { %v400_v12 = vpop.f32.mrf.mxu0 }
 0x109   : > { %v477_v19 = vpop.f32.mrf.mxu1 }
 0x10a   : > { %v478_v57 = vadd.f32 %v477_v19, %v368_v50 }
 0x10b   : > { %v430_v14 = vpop.f32.mrf.mxu3 }
 0x10c   : > { %v403_v15 = vpop.f32.mrf.mxu0 }
 0x111   : > { %v480_v23 = vpop.f32.mrf.mxu1 }
 0x112   : > { %v481_v55 = vadd.f32 %v480_v23, %v368_v50 }
 0x113   : > { %v433_v16 = vpop.f32.mrf.mxu3 }
 0x114   : > { %v406_v17 = vpop.f32.mrf.mxu0 }
 0x119   : > { %v483_v27 = vpop.f32.mrf.mxu1 }
 0x11a   : > { %v484_v56 = vadd.f32 %v483_v27, %v368_v50 }
 0x11c   : > { %v409_v18 = vpop.f32.mrf.mxu0 }
 0x121   : > { %v486_v48 = vpop.f32.mrf.mxu1 }
 0x122   : > { %v487_v51 = vadd.f32 %v486_v48, %v368_v50 }
 0x124   : > { %v412_v20 = vpop.f32.mrf.mxu0 }
 0x129   : > { %v489_v31 = vpop.f32.mrf.mxu1 }
 0x12a   : > { %v490_v47 = vadd.f32 %v489_v31, %v368_v50 }
 0x12c   : > { %v415_v22 = vpop.f32.mrf.mxu0 }
 0x131   : > { %v492_v35 = vpop.f32.mrf.mxu1 }
 0x132   : > { %v493_v54 = vadd.f32 %v492_v35, %v368_v50 }
 0x139   : > { %v495_v49 = vpop.f32.mrf.mxu1 }
 0x13a   : > { %v496_v43 = vadd.f32 %v495_v49, %v368_v50 }
 0x141   : > { %v498_v52 = vpop.f32.mrf.mxu1 }
 0x142   : > { %v499_v53 = vadd.f32 %v498_v52, %v368_v50 }
 0x144   : > { %572 = vmatpush.xpose.msra.mxu2 %v499_v53 }
 0x148   : > { %573 = vmatpush.xpose.msra.mxu2 %v496_v43 }
 0x14c   : > { %574 = vmatpush.xpose.msra.mxu2 %v493_v54 }
 0x150   : > { %575 = vmatpush.xpose.msra.mxu2 %v490_v47 }
 0x154   : > { %576 = vmatpush.xpose.msra.mxu2 %v487_v51 }
 0x158   : > { %577 = vmatpush.xpose.msra.mxu2 %v484_v56 }
 0x15c   : > { %578 = vmatpush.xpose.msra.mxu2 %v481_v55 }
 0x160   : > { %579 = vmatpush.xpose.msra.mxu2 %v478_v57 }
 0x164   : > { %580 = vmatpush.xpose.msra.mxu2 %v475_v59 }
 0x168   : > { %581 = vmatpush.xpose.msra.mxu2 %v472_v61 }
 0x16c   : > { %582 = vmatpush.xpose.msra.mxu2 %v469_v63 }
 0x170   : > { %583 = vmatpush.xpose.msra.mxu2 %v466_v1 }
 0x174   : > { %584 = vmatpush.xpose.msra.mxu2 %v463_v3 }
 0x178   : > { %585 = vmatpush.xpose.msra.mxu2 %v460_v5 }
 0x17c   : > { %586 = vmatpush.xpose.msra.mxu2 %v457_v8 }
 0x180   : > { %587 = vmatpush.xpose.msra.mxu2 %v454_v11 }
 0x183   : > { %588 = vmatmul.f32.vlgmr.msra.gmra.mxu2 %v501_v13 }
 0x206   : > { %v589_v29 = vpop.f32.mrf.mxu2 }
 0x207   : > { %v590_v21 = vadd.f32 %v589_v29, %v571_v28 }
 0x209   : > { %592 = vmax.xlane.f32.xlu0 %v590_v21 }
 0x27c   : > { %v593_v30 = vpop.xlane.xlu0 %592 }
 0x27d   : > { %v594_v32 = vsub.f32 %v590_v21, %v593_v30 }
 0x27f   : > { %v595_v33 = vmul.f32 1.442695, %v594_v32 }
 0x281   : > { %846 = vpow2.f32 %v595_v33 }
 0x287   : > { %v847_v34 = vpop.eup %846 }
 0x288   : > { %597 = vadd.xlane.f32.xlu0 %v847_v34 }
 0x2fb   : > { %v598_v36 = vpop.xlane.xlu0 %597 }
 0x2fc   : > { %848 = vrcp.f32 %v598_v36 }
 0x302   : > { %v849_v37 = vpop.eup %848 }
 0x303   : > { %v600_v38 = vmul.f32 %v849_v37, %v598_v36 }
 0x305   : > { %v601_v40 = vsub.f32 2.0, %v600_v38 }
 0x307   : > { %v602_v41 = vmul.f32 %v849_v37, %v601_v40 }
 0x309   : > { %v603_v42 = vmul.f32 %v847_v34, %v602_v41 }
 0x30b   : > { %605 = vst.msk [vmem:[%s264_s7] sm:$0xff] %vm604_vm1, %v603_v42 }
 0x30c   : > { %967 = shalt.err (!%p964_p0)
}
 0x30d   : > { %768 = dma.vmem_to_hbm [thread:$0]  (%p1139_p2), %s621_s8, 128, %s623_s11, %s607_s12  }
 0x30e PF: > { %s634_s26 = sand.u32 1, %s1006_s15   ;;  %p782_p4 = pnand %p728_p10, %p1107_p5 }
 0x30f   : > { %s635_s23 = scalar_lea.sflag [#allocation6], %s634_s26 }
 0x310   : > { %p783_p6 = pneg %p782_p4 }
 0x312   : > { %1001 = dma.done.wait (%p783_p6), %s635_s23, 128  }
 0x313   : > { %1003 = vsyncadd (%p783_p6), %s635_s23, 4294967168  ;;  %s21_s20 = sadd.s32 1, %s1026_s20   ;;  %s1321_s15 = smov %s1010_s16 }
 0x314   : > { %p18_p8 = scmp.ge.s32.totalorder %s21_s20, 4   ;;  %s1322_s16 = smov %s1014_s17 }
 0x315   : > { %s1323_s17 = smov %s1149_s6  ;;  %s1324_s18 = smov %s1022_s19 }
 0x316   : > { %s1325_s19 = smov %s1327_s22  ;;  %20 = sbr.rel (!%p18_p8) target bundleno = 9 (0x9), region = 94 }
 0x31b   :  { %641 = vsyncpa [#allocation5], 1 }
 0x31c   :  { %643 = vsyncpa [#allocation5 + $0x1], 1 }
 0x31d   :  { %644 = vsyncpa [#allocation8], 1 }
 0x31e   :  { %645 = vsyncpa [#allocation6], 1 }
 0x31f   :  { %647 = vsyncpa [#allocation6 + $0x1], 1 }

</bundles_post_ra>
